<compile_context>
chip_gen: v6e
topology: v6e:2x2x1
jax: 0.10.0
libtpu: 0.0.40
codegen_flags: <defaults>
</compile_context>

<pallas_src>
import jax
import jax.numpy as jnp
from jax.experimental import pallas as pl
from jax.experimental.pallas import tpu as pltpu


_NEG_BIG = -1e30  # stand-in for -inf on padded class columns (f32-safe only)


def _round_up(x, m):
    return ((x + m - 1) // m) * m


def _vmem_capacity_bytes():
    try:
        return int(pltpu.get_tpu_info().vmem_capacity_bytes)
    except Exception:
        return 64 * 1024 * 1024  # conservative fallback (v7x per-TC VMEM)


def prepare_head_params(w, b, cp):
    """bf16, 128-lane padded weight and -1e30-padded f32 bias.

    For large C this is a full pass over W -- hoist/precompute it outside the
    hot step (module state) instead of paying it every forward.
    """
    h, c = w.shape
    w_p = jnp.pad(w.astype(jnp.bfloat16), ((0, 0), (0, cp - c)))
    b_p = jnp.pad(b.astype(jnp.float32).reshape(1, c), ((0, 0), (0, cp - c)),
                  constant_values=_NEG_BIG)
    return w_p, b_p


def _choose_tile_rows(R, H, Cp, C, cap):
    """Largest row tile whose working set fits ~70% of per-core VMEM, then
    shrink so the row grid has >= 2 steps (v7x has 2 TensorCores)."""
    budget = int(0.70 * cap)
    fixed = 2 * (H * Cp * 2 + Cp * 4)                          # resident W (dbl-buffered) + bias
    per_row = 2 * (H * 4) + 2 * (C * 4) + H * 2 + 4 * Cp * 4   # x/out dbl-buf + bf16 x + f32 softmax temps
    tr = 8
    for cand in (2048, 1024, 512, 256, 128, 64, 32, 16, 8):
        if fixed + cand * per_row <= budget:
            tr = cand
            break
    if R <= 8:
        tr = R                                   # block == full row dim
        return tr, fixed + tr * per_row
    tr = min(tr, (R // 8) * 8)                   # keep TR a multiple of 8, <= R
    if pl.cdiv(R, tr) < 2:                       # give both v7x cores work
        tr = max(8, min(_round_up(pl.cdiv(R, 2), 8), (R // 8) * 8))
    return tr, fixed + tr * per_row


def _head_kernel(x_ref, w_ref, b_ref, o_ref):
    # x_ref: (TR, H) f32 | w_ref: (H, Cp) bf16 | b_ref: (1, Cp) f32 | o_ref: (TR, C) f32
    x = x_ref[...].astype(jnp.bfloat16)          # in-kernel cast: no extra HBM pass
    logits = jnp.dot(x, w_ref[...], preferred_element_type=jnp.float32) + b_ref[...]
    # numerically stable log-softmax over the class (lane) axis, all in f32
    m = jnp.max(logits, axis=-1, keepdims=True)
    shifted = logits - m
    lse = jnp.log(jnp.sum(jnp.exp(shifted), axis=-1, keepdims=True))
    out = shifted - lse
    c = o_ref.shape[-1]
    o_ref[...] = out[:, :c].astype(o_ref.dtype)  # drop padded class columns at the store


def classification_head(x, w, b):
    """x: [B, T, H], w: [H, C], b: [C] -> log_softmax(x @ w + b, axis=2), f32 [B, T, C]."""
    B, T, H = x.shape
    C = w.shape[1]
    R = B * T

    # Lane-dense MXU N-dim.  (For compute-bound C > 128 on v6e/v7x, a multiple
    # of 256 can map better onto the 2x256x256 MXU -- benchmark if it matters.)
    Cp = _round_up(max(C, 128), 128)

    cap = _vmem_capacity_bytes()
    TR, need = _choose_tile_rows(R, H, Cp, C, cap)
    grid_rows = pl.cdiv(R, TR)

    w_p, b_p = prepare_head_params(w, b, Cp)     # hoistable for large C
    x2 = x.reshape(R, H)                         # metadata-only reshape; original dtype

    # VMEM limit: generous headroom over the actual need, never below it,
    # never above (most of) the per-core capacity.
    vmem_limit = int(min(max(need + need // 4, 32 * 1024 * 1024), int(0.9 * cap)))
    vmem_limit = max(vmem_limit, need + (2 << 20))
    vmem_limit = int(min(vmem_limit, cap))

    cost = pl.CostEstimate(
        flops=2 * R * H * Cp,
        transcendentals=R * Cp,
        bytes_accessed=(x2.size * x2.dtype.itemsize + w_p.size * 2
                        + b_p.size * 4 + R * C * 4),
    )

    out = pl.pallas_call(
        _head_kernel,
        out_shape=jax.ShapeDtypeStruct((R, C), jnp.float32),
        grid_spec=pltpu.PrefetchScalarGridSpec(
            num_scalar_prefetch=0,
            grid=(grid_rows,),
            in_specs=[
                pl.BlockSpec((TR, H), lambda i: (i, 0)),   # row-tiled activations (orig dtype)
                pl.BlockSpec((H, Cp), lambda i: (0, 0)),   # resident bf16 weight (DMA'd once)
                pl.BlockSpec((1, Cp), lambda i: (0, 0)),   # resident f32 bias
            ],
            out_specs=pl.BlockSpec((TR, C), lambda i: (i, 0)),  # unpadded store (no wrapper slice)
        ),
        compiler_params=pltpu.CompilerParams(
            dimension_semantics=("parallel",),   # shards the row axis across v7x's 2 TCs
            vmem_limit_bytes=vmem_limit,
        ),
        cost_estimate=cost,
    )(x2, w_p, b_p)

    # TODO(synk): for vocab-sized C (resident bf16 weight H*Cp*2 approaching
    # ~16-24 MiB on v7x / ~48 MiB on v6e-v5e), add a class-block grid axis with
    # an online log-sum-exp (flash-style) instead of a fully resident weight.
    return out.reshape(B, T, C)


if __name__ == "__main__":
    # Shapes implied by the module: x [B, T, hidden_dims] -> [B, T, nclasses]
    B, T, H, C = 2, 8, 32, 10

    key = jax.random.PRNGKey(0)
    kx, kw, kb = jax.random.split(key, 3)

    # Deterministic synthetic params (PyTorch Linear default: U(-1/sqrt(H), 1/sqrt(H)))
    bound = 1.0 / (H ** 0.5)
    w = jax.random.uniform(kw, (H, C), jnp.float32, -bound, bound)
    b = jax.random.uniform(kb, (C,), jnp.float32, -bound, bound)
    x = jax.random.normal(kx, (B, T, H), jnp.float32)

    out = jax.block_until_ready(classification_head(x, w, b))

    # Sanity check vs plain-JAX f32 reference (bf16 MXU operands -> bf16-level tol)
    ref = jax.nn.log_softmax(jnp.einsum("bth,hc->btc", x, w) + b, axis=2)
    assert out.shape == (B, T, C)
    assert jnp.allclose(out, ref, atol=3e-2, rtol=3e-2), "mismatch vs reference"

    print("KERNEL_OK")
</pallas_src>

<mosaic_0001>
module attributes {stable_mosaic.version = 11 : i64} {
  func.func @_head_kernel(%arg0: i32, %arg1: memref<8x32xf32, #tpu.memory_space<vmem>>, %arg2: memref<32x128xbf16, #tpu.memory_space<vmem>>, %arg3: memref<1x128xf32, #tpu.memory_space<vmem>>, %arg4: memref<8x10xf32, #tpu.memory_space<vmem>>) attributes {dimension_semantics = [#tpu.dimension_semantics<parallel>], iteration_bounds = array<i64: 2>, scalar_prefetch = 0 : i64, scratch_operands = 0 : i64, tpu.core_type = #tpu.core_type<tc>, window_params = [{transform_indices = @transform_0, window_bounds = array<i64: 8, 32>}, {pipeline_mode = #tpu.pipeline_mode<synchronous>, transform_indices = @transform_1, window_bounds = array<i64: 32, 128>}, {pipeline_mode = #tpu.pipeline_mode<synchronous>, transform_indices = @transform_2, window_bounds = array<i64: 1, 128>}, {transform_indices = @transform_3, window_bounds = array<i64: 8, 10>}]} {
    %c0 = arith.constant 0 : index
    %c0_0 = arith.constant 0 : index
    %0 = vector.load %arg1[%c0, %c0_0] : memref<8x32xf32, #tpu.memory_space<vmem>>, vector<8x32xf32>
    %1 = arith.truncf %0 : vector<8x32xf32> to vector<8x32xbf16>
    %c0_1 = arith.constant 0 : index
    %c0_2 = arith.constant 0 : index
    %2 = vector.load %arg2[%c0_1, %c0_2] : memref<32x128xbf16, #tpu.memory_space<vmem>>, vector<32x128xbf16>
    %cst = arith.constant dense<0.000000e+00> : vector<8x128xf32>
    %3 = tpu.matmul %1, %2, %cst {dimension_numbers = #tpu.dot_dimension_numbers<[1], [0], [0], [1], [0, 0, 1, 1], [], []>} : vector<8x32xbf16>, vector<32x128xbf16>, vector<8x128xf32> -> vector<8x128xf32>
    %c0_3 = arith.constant 0 : index
    %c0_4 = arith.constant 0 : index
    %4 = vector.load %arg3[%c0_3, %c0_4] : memref<1x128xf32, #tpu.memory_space<vmem>>, vector<1x128xf32>
    %5 = vector.broadcast %4 : vector<1x128xf32> to vector<8x128xf32>
    %6 = arith.addf %3, %5 : vector<8x128xf32>
    %cst_5 = arith.constant dense<0xFF800000> : vector<8xf32>
    %7 = vector.multi_reduction <maximumf>, %6, %cst_5 [1] : vector<8x128xf32> to vector<8xf32>
    %8 = vector.shape_cast %7 : vector<8xf32> to vector<8x1xf32>
    %9 = vector.broadcast %8 : vector<8x1xf32> to vector<8x128xf32>
    %10 = arith.subf %6, %9 : vector<8x128xf32>
    %11 = math.exp %10 : vector<8x128xf32>
    %cst_6 = arith.constant dense<0.000000e+00> : vector<8xf32>
    %12 = vector.multi_reduction <add>, %11, %cst_6 [1] : vector<8x128xf32> to vector<8xf32>
    %13 = vector.shape_cast %12 : vector<8xf32> to vector<8x1xf32>
    %14 = math.log %13 : vector<8x1xf32>
    %15 = vector.broadcast %14 : vector<8x1xf32> to vector<8x128xf32>
    %16 = arith.subf %10, %15 : vector<8x128xf32>
    %17 = vector.extract_strided_slice %16 {offsets = [0, 0], sizes = [8, 10], strides = [1, 1]} : vector<8x128xf32> to vector<8x10xf32>
    %c0_7 = arith.constant 0 : index
    %c0_8 = arith.constant 0 : index
    %18 = vector.load %arg4[%c0_7, %c0_8] : memref<8x10xf32, #tpu.memory_space<vmem>>, vector<8x10xf32>
    tpu.vector_store %arg4[%c0_7, %c0_8], %17 {strides = array<i32>} : memref<8x10xf32, #tpu.memory_space<vmem>>, vector<8x10xf32>,
    return
  }
  func.func @transform_0(%arg0: i32) -> (i32, i32) {
    %c0_i32 = arith.constant 0 : i32
    %c0_i32_0 = arith.constant 0 : i32
    return %arg0, %c0_i32 : i32, i32
  }
  func.func @transform_1(%arg0: i32) -> (i32, i32) {
    %c0_i32 = arith.constant 0 : i32
    %c0_i32_0 = arith.constant 0 : i32
    %c0_i32_1 = arith.constant 0 : i32
    return %c0_i32, %c0_i32_0 : i32, i32
  }
  func.func @transform_2(%arg0: i32) -> (i32, i32) {
    %c0_i32 = arith.constant 0 : i32
    %c0_i32_0 = arith.constant 0 : i32
    %c0_i32_1 = arith.constant 0 : i32
    return %c0_i32, %c0_i32_0 : i32, i32
  }
  func.func @transform_3(%arg0: i32) -> (i32, i32) {
    %c0_i32 = arith.constant 0 : i32
    %c0_i32_0 = arith.constant 0 : i32
    return %arg0, %c0_i32 : i32, i32
  }
}

</mosaic_0001>

<bundles_post_ra>
// kernel: tpu_custom_call.1
= control target key start
LH: loop header
LB: loop body
LE: loop exit
PB: predicated region body
PF: predicated region fallthrough
CT: control target
= control target key end

     0   :  { %8 = vsyncpa [#allocation3], 0  ;;  %s785_s0 = inlined_call_operand.hbm [shape: f32[16,32], index: 0, kind: input, shape index: {}]   ;;  %s786_s1 = inlined_call_operand.hbm [shape: bf16[32,128], index: 1, kind: input, shape index: {}]   ;;  %s787_s2 = inlined_call_operand.vmem [shape: f32[1,128], index: 2, kind: input, shape index: {}]   ;;  %s788_s3 = inlined_call_operand.hbm [shape: f32[16,10], index: 3, kind: output, shape index: {}]  }
   0x1   :  { %10 = vsyncpa [#allocation3 + $0x1], 0 }
   0x2   :  { %11 = vsyncpa [#allocation6], 0 }
   0x3   :  { %12 = vsyncpa [#allocation4], 0 }
   0x4   :  { %14 = vsyncpa [#allocation4 + $0x1], 0  ;;  %s624_s12 = smov 0   ;;  %s626_s13 = smov 0  }
   0x5   :  { %s628_s14 = smov 0   ;;  %s630_s15 = smov 0  }
   0x6 LB: > { %s645_s16 = sadd.s32 4294967295, %s595_s15   ;;  %s377_s17 = sadd.s32 4294967294, %s595_s15   ;;  %s595_s15 = sphi %s630_s15, %s810_s15   ;;  %s591_s14 = sphi %s628_s14, %s809_s14   ;;  %s587_s13 = sphi %s626_s13, %s808_s13   ;;  %s583_s12 = sphi %s624_s12, %s807_s12  }
   0x7   : > { %p40_p0 = scmp.ne.s32.totalorder %s587_s13, %s583_s12  ;;  %p789_p1 = scmp.eq.s32.totalorder %s645_s16, 0 }
   0x8   : > { %p112_p3 = scmp.eq.s32.totalorder %s377_s17, 1  ;;  %p378_p5 = scmp.ge.s32.totalorder %s595_s15, 1 }
   0x9   : > { %p654_p4 = por %p789_p1, %p40_p0  ;;  %p119_p7 = scmp.lt.s32.totalorder %s595_s15, 3 }
   0xa   : > { %p659_p6 = por %p112_p3, %p40_p0  ;;  %s597_s21 = smov [#allocation5]  }
   0xb   : > { %s793_s18 = scalar_select %p654_p4, 1, 0 }
   0xc   : > { %s794_s19 = scalar_select %p659_p6, 1, 0 }
   0xd   : > { %p664_p8 = pnand %p378_p5, %p119_p7  ;;  %s131_s22 = sshll.u32 %s597_s21, 4  ;;  %s132_s22 = int_to_ptr.vmem [resolvable:$true] %s131_s22 }
   0xe   : > { %s678_s24 = sadd.s32 1, %s595_s15   ;;  %s27_s25 = sadd.s32 1, %s591_s14 }
   0xf   : > { %s795_s20 = scalar_select %p664_p8, 1, 0 }
  0x10   : > { %p414_p9 = pneg %p664_p8  ;;  %s24_s26 = ssub.s32 %s595_s15, %s678_s24 }
  0x11   : > { %s484_s27 = scalar_lea.vmem %s132_s22, 256  ;;  %p492_p5 = scmp.lt.s32.totalorder %s132_s22, %s132_s22 }
  0x12   : > { %p673_p11 = pnand %p414_p9, %p789_p1  ;;  %p485_p13 = scmp.ne.s32.totalorder %s132_s22, %s484_s27 }
  0x13   : > { %p493_p7 = scmp.lt.s32.totalorder %s484_s27, %s484_s27 }
  0x14   : > { %p475_p12 = pneg %p673_p11 }
  0x15   : > { %p494_p10 = por %p493_p7, %p492_p5 }
  0x16   : > { %p487_p0 = pnand %p485_p13, %p475_p12 }
  0x18   : > { %p488_p3 = pneg %p487_p0 }
  0x1a   : > { %p495_p2 = pnand %p494_p10, %p488_p3 }
  0x1c   : > { %498 = shalt.err (!%p495_p2)
}
  0x1d   : > { %s598_s28 = smov 64   ;;  %s599_s29 = smov 4  }
  0x1e   : > { %417 = dma.hbm_to_vmem [thread:$0]  (!%p673_p11), %s786_s1, 256, %s132_s22, [#allocation6], %s598_s28, %s598_s28, %s599_s29  }
  0x1f   : > { %p25_p9 = scmp.eq.s32.totalorder %s24_s26, 0  ;;  %p34_p12 = scmp.ne.s32.totalorder %s591_s14, %s587_s13 }
  0x20   : > { %p35_p10 = scmp.eq.s32.totalorder %s595_s15, 0  ;;  %p427_p2 = scmp.lt.s32.totalorder %s595_s15, 2 }
  0x21   : > { %s695_s5 = scalar_select %p25_p9, %s591_s14, %s27_s25  }
  0x22   : > { %p36_p13 = por %p35_p10, %p34_p12  ;;  %p797_p0 = scmp.eq.s32.totalorder %s645_s16, 1 }
  0x23   : > { %s148_s7 = sand.u32 1, %s591_s14   ;;  %s382_s8 = sshll.u32 %s595_s15, 7 }
  0x24   : > { %p699_p3 = por %p797_p0, %p34_p12  ;;  %s381_s9 = sshll.u32 %s148_s7, 3 }
  0x25   : > { %s708_s17 = scalar_lea.hbm %s785_s0, %s382_s8  ;;  %s152_s21 = scalar_lea.vmem [#allocation2], %s381_s9 }
  0x26   : > { %s798_s6 = scalar_select %p699_p3, 1, 0 }
  0x27   : > { %s159_s22 = sshll.u32 %s152_s21, 4  ;;  %p710_p11 = pnand %p427_p2, %p36_p13  ;;  %s160_s22 = int_to_ptr.vmem [resolvable:$true] %s159_s22 }
  0x28   : > { %s149_s25 = scalar_lea.sflag [#allocation3], %s148_s7  ;;  %s499_s26 = scalar_lea.hbm %s708_s17, 128 }
  0x29   : > { %p500_p5 = scmp.ne.s32.totalorder %s708_s17, %s499_s26  ;;  %p501_p7 = pneg %p710_p11 }
  0x2a   : > { %s504_s29 = scalar_lea.hbm %s785_s0, 256  ;;  %p505_p10 = scmp.lt.s32.totalorder %s708_s17, %s785_s0 }
  0x2b   : > { %p502_p9 = pnand %p501_p7, %p500_p5  ;;  %p506_p2 = scmp.lt.s32.totalorder %s504_s29, %s499_s26 }
  0x2d   : > { %p503_p12 = pneg %p502_p9  ;;  %p507_p13 = por %p506_p2, %p505_p10 }
  0x2f   : > { %p508_p0 = pnand %p507_p13, %p503_p12 }
  0x31   : > { %511 = shalt.err (!%p508_p0)
}
  0x32   : > { %s512_s8 = scalar_lea.vmem %s160_s22, 128  ;;  %s600_s7 = smov [#allocation2]  }
  0x33   : > { %p513_p1 = scmp.ne.s32.totalorder %s160_s22, %s512_s8  ;;  %s517_s9 = sshll.u32 %s600_s7, 4  ;;  %s518_s9 = int_to_ptr.vmem [resolvable:$false] %s517_s9 }
  0x34   : > { %s519_s10 = scalar_lea.vmem %s518_s9, 256  ;;  %p520_p5 = scmp.lt.s32.totalorder %s160_s22, %s518_s9 }
  0x35   : > { %p515_p6 = pnand %p513_p1, %p501_p7  ;;  %p521_p9 = scmp.lt.s32.totalorder %s519_s10, %s512_s8 }
  0x37   : > { %p516_p3 = pneg %p515_p6  ;;  %p522_p4 = por %p521_p9, %p520_p5 }
  0x39   : > { %p523_p8 = pnand %p522_p4, %p516_p3 }
  0x3b   : > { %526 = shalt.err (!%p523_p8)
}
  0x3c   : > { %421 = dma.hbm_to_vmem [thread:$0]  (!%p710_p11), %s708_s17, 128, %s160_s22, %s149_s25  }
  0x3d   : > { %p800_p12 = scmp.ne.s32.totalorder %s795_s20, 0 }
  0x3e   : > { %s731_s11 = sand.u32 (!%p800_p12), 1, %s587_s13   ;;  %p801_p1 = scmp.ne.s32.totalorder (!%p800_p12), %s793_s18, 0 }
  0x3f   : > { %168 = sbr.rel (%p800_p12) target bundleno = 601 (0x259), region = 32  ;;  %s384_s21 = sshll.u32 (!%p800_p12), %s731_s11, 3 }
  0x40   : > { %s171_s26 = scalar_lea.sflag (!%p800_p12), [#allocation3], %s731_s11  ;;  %s174_s27 = scalar_lea.vmem (!%p800_p12), [#allocation2], %s384_s21 }
  0x44   : > { %570 = dma.done.wait (%p801_p1), %s171_s26, 128  }
  0x45   : > { %572 = vsyncadd (%p801_p1), %s171_s26, 4294967168  ;;  %p802_p4 = scmp.eq.s32.totalorder %s645_s16, 0 }
  0x47   : > { %574 = dma.done.wait (%p802_p4), [#allocation6], 256   ;;  %p803_p6 = pmov %p802_p4 }
  0x48   : > { %v601_v0 = vmov 0.0   ;;  %vm602_vm0 = vmmov 0   ;;  %v467_v1 = vld [vmem:[#allocation5 + $0x8] sm:$0xff]   ;;  %v468_v2 = vld [vmem:[#allocation5] sm:$0xff]   ;;  %v202_v3 = vld [vmem:[%s174_s27] sm:$0xff]  ;;  %vm227_vm1 = vcmask 261120  }
  0x49   : > { %576 = vsyncadd (%p803_p6), [#allocation6], 4294967040  ;;  %398 = vmatprep.subr.bf16.mxu0 %v601_v0  ;;  %402 = vmatprep.mubr.msk.bf16.mxu0 %vm602_vm0, %v601_v0  ;;  %v203_v4 = vpack.c.bf16 %v202_v3, %v202_v3  ;;  %v387_v5 = vld [vmem:[%s787_s2] ss:$0 sm:$0xff]  ;;  %s392_s17 = sshll.u32 %s645_s16, 7  ;;  %s200_s22 = scalar_lea.vmem [#allocation7], %s384_s21 }
  0x4a   : > { %399 = vmatpush3.bf16.msra.mxu0 %v467_v1  ;;  %s297_s23 = sshll.u32 %s200_s22, 4  ;;  %vm281_vm2 = vcmask 80896   ;;  %s295_s29 = scalar_lea.hbm %s788_s3, %s392_s17  ;;  %s298_s23 = int_to_ptr.vmem [resolvable:$true] %s297_s23 }
  0x4b   : > { %400 = vmatprep.subr.bf16.mxu0 %v601_v0  ;;  %s284_s30 = scalar_lea.sflag [#allocation4], %s731_s11  ;;  %s527_s4 = scalar_lea.vmem %s298_s23, 128 }
  0x4c   : > { %p528_p8 = scmp.ne.s32.totalorder %s298_s23, %s527_s4  ;;  %p804_p3 = scmp.ne.s32.totalorder %s798_s6, 0 }
  0x4d   : > { %s603_s8 = smov [#allocation7]  }
  0x4e   : > { %401 = vmatpush3.bf16.msra.mxu0 %v468_v2  ;;  %p529_p11 = pnand %p528_p8, %p804_p3  ;;  %s531_s16 = sshll.u32 %s603_s8, 4  ;;  %s532_s16 = int_to_ptr.vmem [resolvable:$false] %s531_s16 }
  0x4f   : > { %s533_s7 = scalar_lea.vmem %s532_s16, 256  ;;  %p534_p10 = scmp.lt.s32.totalorder %s298_s23, %s532_s16 }
  0x50   : > { %p530_p7 = pneg %p529_p11  ;;  %p535_p2 = scmp.lt.s32.totalorder %s533_s7, %s527_s4 }
  0x51   : > { %403 = vmatmul.mubr.msk.bf16.vlgmr.msra.gmra.mxu0 %vm227_vm1, %v203_v4 }
  0x52   : > { %p536_p13 = por %p535_p2, %p534_p10 }
  0x54   : > { %p537_p0 = pnand %p536_p13, %p530_p7 }
 0x111   : > { %v265_v6 = vpop.f32.mrf.mxu0 }
 0x112   : > { %v266_v7 = vadd.f32 %v387_v5, %v265_v6 }
 0x113   : > { %v404_v8 = vpop.f32.mrf.mxu0 }
 0x114   : > { %271 = vmax.xlane.f32.xlu0 %v266_v7 }
 0x115   : > { %v268_v9 = vpop.f32.mrf.mxu0 }
 0x117   : > { %v405_v10 = vpop.f32.mrf.mxu0 }
 0x19d   : > { %v272_v11 = vpop.xlane.xlu0 %271 }
 0x19e   : > { %v273_v12 = vsub.f32 %v266_v7, %v272_v11 }
 0x1a0   : > { %v274_v13 = vmul.f32 1.442695, %v273_v12 }
 0x1a2   : > { %469 = vpow2.f32 %v274_v13 }
 0x1af   : > { %v470_v14 = vpop.eup %469 }
 0x1b0   : > { %276 = vadd.xlane.f32.xlu0 %v470_v14 }
 0x239   : > { %v277_v15 = vpop.xlane.xlu0 %276 }
 0x23a   : > { %471 = vlog2.f32 %v277_v15 }
 0x247   : > { %v472_v16 = vpop.eup %471 }
 0x248   : > { %v279_v17 = vmul.f32 0.6931472, %v472_v16 }
 0x24a   : > { %v280_v18 = vsub.f32 %v273_v12, %v279_v17 }
 0x24c   : > { %282 = vst.msk [vmem:[%s200_s22] sm:$0xff] %vm281_vm2, %v280_v18 }
 0x24d   : > { %540 = shalt.err (!%p537_p0)
}
 0x24e   : > { %s541_s9 = scalar_lea.hbm %s295_s29, 128  ;;  %s545_s21 = scalar_lea.hbm %s788_s3, 256 }
 0x24f   : > { %p542_p5 = scmp.ne.s32.totalorder %s295_s29, %s541_s9  ;;  %p546_p1 = scmp.lt.s32.totalorder %s295_s29, %s788_s3 }
 0x250   : > { %p547_p4 = scmp.lt.s32.totalorder %s545_s21, %s541_s9 }
 0x251   : > { %p543_p9 = pnand %p542_p5, %p804_p3 }
 0x252   : > { %p548_p6 = por %p547_p4, %p546_p1 }
 0x253   : > { %p544_p12 = pneg %p543_p9 }
 0x255   : > { %p549_p8 = pnand %p548_p6, %p544_p12 }
 0x257   : > { %552 = shalt.err (!%p549_p8)
}
 0x258   : > { %412 = dma.vmem_to_hbm [thread:$0]  (%p804_p3), %s298_s23, 128, %s295_s29, %s284_s30  }
 0x259 PF: > { %s309_s18 = sand.u32 1, %s583_s12   ;;  %p805_p11 = scmp.ne.s32.totalorder %s794_s19, 0 }
 0x25a   : > { %p806_p7 = scmp.ge.s32.totalorder %s595_s15, 2  ;;  %s310_s20 = scalar_lea.sflag [#allocation4], %s309_s18 }
 0x25c   : > { %p423_p10 = pnand %p806_p7, %p805_p11 }
 0x25e   : > { %p424_p2 = pneg %p423_p10 }
 0x260   : > { %578 = dma.done.wait (%p424_p2), %s310_s20, 128  }
 0x261   : > { %580 = vsyncadd (%p424_p2), %s310_s20, 4294967168  ;;  %p17_p13 = scmp.ge.s32.totalorder %s678_s24, 4   ;;  %s807_s12 = smov %s587_s13 }
 0x262   : > { %s808_s13 = smov %s591_s14  ;;  %s809_s14 = smov %s695_s5 }
 0x263   : > { %s810_s15 = smov %s678_s24  ;;  %19 = sbr.rel (!%p17_p13) target bundleno = 6 (0x6), region = 81 }
 0x268   :  { %315 = vsyncpa [#allocation3], 1 }
 0x269   :  { %317 = vsyncpa [#allocation3 + $0x1], 1 }
 0x26a   :  { %318 = vsyncpa [#allocation6], 1 }
 0x26b   :  { %319 = vsyncpa [#allocation4], 1 }
 0x26c   :  { %321 = vsyncpa [#allocation4 + $0x1], 1 }

</bundles_post_ra>
